<compile_context>
chip_gen: v5e
topology: v5e:2x2
jax: 0.10.0
libtpu: 0.0.40
codegen_flags: <defaults>
</compile_context>

<pallas_src>
import math
from typing import NamedTuple

import jax
import jax.numpy as jnp
from jax.experimental import pallas as pl
from jax.experimental.pallas import tpu as pltpu


def _round_up(x, m):
    return ((x + m - 1) // m) * m


# --------------------------------------------------------------------------
# Kernel
# --------------------------------------------------------------------------
def llama_ffn_kernel(x_ref, wgu_ref, wd_ref, o_ref, acc_ref):
    # x_ref:   (tm, H)       tile of tokens (weight dtype, e.g. bf16)
    # wgu_ref: (H, 2*tI)     [gate | up] weight tile for I-block k (transposed)
    # wd_ref:  (tI, H)       down_proj weight tile for I-block k (transposed)
    # o_ref:   (tm, H)       output tile (resident across the I axis)
    # acc_ref: (tm, H) f32   VMEM accumulator for the down projection
    k = pl.program_id(1)

    @pl.when(k == 0)
    def _():
        acc_ref[...] = jnp.zeros_like(acc_ref)

    ti = wd_ref.shape[0]

    # Fused gate+up projection: one MXU pass producing (tm, 2*tI) in f32.
    gu = jnp.dot(x_ref[...], wgu_ref[...], preferred_element_type=jnp.float32)
    g = gu[:, :ti]
    u = gu[:, ti:]

    # SwiGLU activation in f32 (sigmoid on the EUP, mul on the VPU).
    h = (g * jax.nn.sigmoid(g)) * u

    # Down projection tile, accumulated in f32.
    acc_ref[...] += jnp.dot(h.astype(wd_ref.dtype), wd_ref[...],
                            preferred_element_type=jnp.float32)

    @pl.when(k == pl.num_programs(1) - 1)
    def _():
        o_ref[...] = acc_ref[...].astype(o_ref.dtype)


# --------------------------------------------------------------------------
# Weight preparation (run ONCE at weight-load time, not per call)
# --------------------------------------------------------------------------
class PreparedFFNWeights(NamedTuple):
    wgu: jax.Array    # (H, 2*I_pad): per I-block interleaved [gate_k | up_k]
    wd_t: jax.Array   # (I_pad, H)
    block_i: int      # tI used for the interleaving (multiple of 128)


def prepare_llama_ffn_weights(wg, wu, wd, *, block_i=512,
                              weight_dtype=jnp.bfloat16):
    """Pre-transpose torch-layout weights, pad I, interleave gate/up per block.

    wg, wu: (I, H)  torch nn.Linear(hidden, intermediate).weight
    wd:     (H, I)  torch nn.Linear(intermediate, hidden).weight
    """
    I, H = wg.shape
    assert wu.shape == (I, H) and wd.shape == (H, I)
    assert block_i % 128 == 0, "block_i must be a multiple of 128 (lane tile)"

    ti = min(block_i, _round_up(I, 128))
    I_pad = _round_up(I, ti)           # zero-pad I so any intermediate size works
    n_i = I_pad // ti

    wg_t = wg.T.astype(weight_dtype)   # (H, I)
    wu_t = wu.T.astype(weight_dtype)   # (H, I)
    wd_t = wd.T.astype(weight_dtype)   # (I, H)
    if I_pad != I:
        pad = I_pad - I
        wg_t = jnp.pad(wg_t, ((0, 0), (0, pad)))
        wu_t = jnp.pad(wu_t, ((0, 0), (0, pad)))
        wd_t = jnp.pad(wd_t, ((0, pad), (0, 0)))

    wgu = jnp.concatenate(
        [wg_t.reshape(H, n_i, ti), wu_t.reshape(H, n_i, ti)], axis=2
    ).reshape(H, 2 * I_pad)
    return PreparedFFNWeights(wgu=wgu, wd_t=wd_t, block_i=ti)


# --------------------------------------------------------------------------
# Tile sizing
# --------------------------------------------------------------------------
def _physical_vmem_bytes():
    try:
        info = pltpu.get_tpu_info()
        for attr in ("vmem_capacity_bytes", "vmem_size_bytes", "vmem_bytes"):
            v = getattr(info, attr, None)
            if v:
                return int(v)
    except Exception:
        pass
    return 64 * 1024 * 1024  # conservative fallback (v7x per-TC VMEM)


def _tile_vmem_bytes(tm, ti, H, x_bytes, w_bytes, o_bytes):
    return (2 * tm * H * x_bytes            # x tile, double-buffered
            + 2 * tm * H * o_bytes          # out tile, double-buffered
            + 2 * H * (2 * ti) * w_bytes    # fused [gate|up] tile, double-buffered
            + 2 * ti * H * w_bytes          # down tile, double-buffered
            + tm * H * 4                    # f32 accumulator
            + tm * (2 * ti) * 4             # gu intermediate (f32)
            + tm * ti * 4)                  # h intermediate (f32)


_TM_CANDIDATES = (1024, 768, 512, 384, 256, 128, 64, 32, 16, 8)


def _select_tm(M, H, ti, x_bytes, w_bytes, o_bytes, budget):
    m_cap = _round_up(M, 8)
    for tm in _TM_CANDIDATES:
        if tm > m_cap:
            continue
        if _tile_vmem_bytes(tm, ti, H, x_bytes, w_bytes, o_bytes) <= budget:
            return tm
    return min(m_cap, 8)


# --------------------------------------------------------------------------
# Wrapper
# --------------------------------------------------------------------------
def llama_ffn(x, weights: PreparedFFNWeights, *, tm=None, vmem_limit_bytes=None):
    """x: (B, S, H); weights: output of prepare_llama_ffn_weights (run once)."""
    B, S, H = x.shape
    wgu, wd_t, ti = weights
    I_pad, H_w = wd_t.shape
    assert H_w == H and wgu.shape == (H, 2 * I_pad) and I_pad % ti == 0
    n_i = I_pad // ti
    M = B * S

    physical = _physical_vmem_bytes()
    if vmem_limit_bytes is None:
        # ~56 MiB on v7x (64 MiB physical), ~112 MiB on v5e/v6e (128 MiB).
        vmem_limit_bytes = (physical * 7) // 8
    # Leave headroom under the limit for Mosaic-internal scratch / semaphores.
    budget = max(vmem_limit_bytes - 4 * 1024 * 1024, 16 * 1024 * 1024)

    w_bytes = jnp.dtype(wgu.dtype).itemsize
    x_bytes = w_bytes                       # x tile is cast to the weight dtype
    o_bytes = jnp.dtype(x.dtype).itemsize

    if tm is None:
        tm = _select_tm(M, H, ti, x_bytes, w_bytes, o_bytes, budget)
    tm = _round_up(min(tm, _round_up(M, 8)), 8)

    # Pad the token axis so any B*S works with a large token tile.
    M_pad = _round_up(M, tm)
    x2d = x.reshape(M, H).astype(wgu.dtype)
    if M_pad != M:
        x2d = jnp.pad(x2d, ((0, M_pad - M), (0, 0)))

    out2d = pl.pallas_call(
        llama_ffn_kernel,
        out_shape=jax.ShapeDtypeStruct((M_pad, H), x.dtype),
        grid_spec=pltpu.PrefetchScalarGridSpec(
            num_scalar_prefetch=0,
            grid=(M_pad // tm, n_i),
            in_specs=[
                pl.BlockSpec((tm, H), lambda i, k: (i, 0)),        # x tile
                pl.BlockSpec((H, 2 * ti), lambda i, k: (0, k)),    # [gate|up] tile
                pl.BlockSpec((ti, H), lambda i, k: (k, 0)),        # down tile
            ],
            out_specs=pl.BlockSpec((tm, H), lambda i, k: (i, 0)),
            scratch_shapes=[pltpu.VMEM((tm, H), jnp.float32)],
        ),
        compiler_params=pltpu.CompilerParams(
            dimension_semantics=("parallel", "arbitrary"),
            vmem_limit_bytes=int(vmem_limit_bytes),
        ),
    )(x2d, wgu, wd_t)

    return out2d[:M].reshape(B, S, H)


def llama_ffn_ref(x, wg, wu, wd):
    x1 = x @ wg.T
    x2 = x @ wu.T
    return (jax.nn.silu(x1) * x2) @ wd.T


if __name__ == "__main__":
    B, S, H, I = 2, 8, 32, 64
    key = jax.random.PRNGKey(0)
    kx, kg, ku, kd = jax.random.split(key, 4)

    x = jax.random.normal(kx, (B, S, H), dtype=jnp.float32)
    # nn.Linear(hidden, intermediate, bias=False).weight -> (intermediate, hidden)
    wg = jax.random.normal(kg, (I, H), dtype=jnp.float32) * (1.0 / math.sqrt(H))
    wu = jax.random.normal(ku, (I, H), dtype=jnp.float32) * (1.0 / math.sqrt(H))
    # nn.Linear(intermediate, hidden, bias=False).weight -> (hidden, intermediate)
    wd = jax.random.normal(kd, (H, I), dtype=jnp.float32) * (1.0 / math.sqrt(I))

    ref = llama_ffn_ref(x, wg, wu, wd)

    # f32 weight path: exact check against the f32 reference.
    prep_f32 = prepare_llama_ffn_weights(wg, wu, wd, weight_dtype=jnp.float32)
    out_f32 = jax.block_until_ready(llama_ffn(x, prep_f32))
    assert out_f32.shape == (B, S, H)
    assert jnp.allclose(out_f32, ref, atol=1e-4, rtol=1e-4)

    # Default (deployment) path: bf16 weights/activations, f32 accumulation.
    prep_bf16 = prepare_llama_ffn_weights(wg, wu, wd)
    out_bf16 = jax.block_until_ready(llama_ffn(x, prep_bf16))
    assert out_bf16.shape == (B, S, H)
    assert jnp.allclose(out_bf16.astype(jnp.float32), ref, atol=5e-2, rtol=5e-2)

    print("KERNEL_OK")
</pallas_src>

<mosaic_0001>
module attributes {stable_mosaic.version = 11 : i64} {
  func.func @llama_ffn_kernel(%arg0: i32, %arg1: i32, %arg2: memref<16x32xf32, #tpu.memory_space<vmem>>, %arg3: memref<32x256xf32, #tpu.memory_space<vmem>>, %arg4: memref<128x32xf32, #tpu.memory_space<vmem>>, %arg5: memref<16x32xf32, #tpu.memory_space<vmem>>, %arg6: memref<16x32xf32, #tpu.memory_space<vmem>>) attributes {dimension_semantics = [#tpu.dimension_semantics<parallel>, #tpu.dimension_semantics<arbitrary>], iteration_bounds = array<i64: 1, 1>, scalar_prefetch = 0 : i64, scratch_operands = 1 : i64, tpu.core_type = #tpu.core_type<tc>, window_params = [{transform_indices = @transform_0, window_bounds = array<i64: 16, 32>}, {transform_indices = @transform_1, window_bounds = array<i64: 32, 256>}, {transform_indices = @transform_2, window_bounds = array<i64: 128, 32>}, {transform_indices = @transform_3, window_bounds = array<i64: 16, 32>}]} {
    %c0_i32 = arith.constant 0 : i32
    %0 = arith.cmpi eq, %arg1, %c0_i32 : i32
    %1 = arith.extui %0 : i1 to i32
    %c0_i32_0 = arith.constant 0 : i32
    %2 = arith.cmpi ne, %1, %c0_i32_0 : i32
    scf.if %2 {
      %cst_14 = arith.constant 0.000000e+00 : f32
      %23 = vector.broadcast %cst_14 : f32 to vector<16x32xf32>
      %c0_15 = arith.constant 0 : index
      %c0_16 = arith.constant 0 : index
      %24 = vector.load %arg6[%c0_15, %c0_16] : memref<16x32xf32, #tpu.memory_space<vmem>>, vector<16x32xf32>
      tpu.vector_store %arg6[%c0_15, %c0_16], %23 {strides = array<i32>} : memref<16x32xf32, #tpu.memory_space<vmem>>, vector<16x32xf32>,
    } else {
    }
    %c0 = arith.constant 0 : index
    %c0_1 = arith.constant 0 : index
    %3 = vector.load %arg2[%c0, %c0_1] : memref<16x32xf32, #tpu.memory_space<vmem>>, vector<16x32xf32>
    %c0_2 = arith.constant 0 : index
    %c0_3 = arith.constant 0 : index
    %4 = vector.load %arg3[%c0_2, %c0_3] : memref<32x256xf32, #tpu.memory_space<vmem>>, vector<32x256xf32>
    %cst = arith.constant dense<0.000000e+00> : vector<16x256xf32>
    %5 = tpu.matmul %3, %4, %cst {dimension_numbers = #tpu.dot_dimension_numbers<[1], [0], [0], [1], [0, 0, 1, 1], [], []>} : vector<16x32xf32>, vector<32x256xf32>, vector<16x256xf32> -> vector<16x256xf32>
    %6 = vector.extract_strided_slice %5 {offsets = [0, 0], sizes = [16, 128], strides = [1, 1]} : vector<16x256xf32> to vector<16x128xf32>
    %7 = vector.extract_strided_slice %5 {offsets = [0, 128], sizes = [16, 128], strides = [1, 1]} : vector<16x256xf32> to vector<16x128xf32>
    %8 = arith.negf %6 : vector<16x128xf32>
    %9 = math.exp %8 : vector<16x128xf32>
    %cst_4 = arith.constant 1.000000e+00 : f32
    %10 = vector.broadcast %cst_4 : f32 to vector<16x128xf32>
    %11 = arith.addf %10, %9 : vector<16x128xf32>
    %12 = arith.divf %10, %11 : vector<16x128xf32>
    %13 = arith.mulf %6, %12 : vector<16x128xf32>
    %14 = arith.mulf %13, %7 : vector<16x128xf32>
    %c0_5 = arith.constant 0 : index
    %c0_6 = arith.constant 0 : index
    %15 = vector.load %arg6[%c0_5, %c0_6] : memref<16x32xf32, #tpu.memory_space<vmem>>, vector<16x32xf32>
    %c0_7 = arith.constant 0 : index
    %c0_8 = arith.constant 0 : index
    %16 = vector.load %arg4[%c0_7, %c0_8] : memref<128x32xf32, #tpu.memory_space<vmem>>, vector<128x32xf32>
    %cst_9 = arith.constant dense<0.000000e+00> : vector<16x32xf32>
    %17 = tpu.matmul %14, %16, %cst_9 {dimension_numbers = #tpu.dot_dimension_numbers<[1], [0], [0], [1], [0, 0, 1, 1], [], []>} : vector<16x128xf32>, vector<128x32xf32>, vector<16x32xf32> -> vector<16x32xf32>
    %18 = arith.addf %15, %17 : vector<16x32xf32>
    %c0_10 = arith.constant 0 : index
    %c0_11 = arith.constant 0 : index
    %19 = vector.load %arg6[%c0_10, %c0_11] : memref<16x32xf32, #tpu.memory_space<vmem>>, vector<16x32xf32>
    tpu.vector_store %arg6[%c0_10, %c0_11], %18 {strides = array<i32>} : memref<16x32xf32, #tpu.memory_space<vmem>>, vector<16x32xf32>,
    %c0_i32_12 = arith.constant 0 : i32
    %20 = arith.cmpi eq, %arg1, %c0_i32_12 : i32
    %21 = arith.extui %20 : i1 to i32
    %c0_i32_13 = arith.constant 0 : i32
    %22 = arith.cmpi ne, %21, %c0_i32_13 : i32
    scf.if %22 {
      %c0_14 = arith.constant 0 : index
      %c0_15 = arith.constant 0 : index
      %23 = vector.load %arg6[%c0_14, %c0_15] : memref<16x32xf32, #tpu.memory_space<vmem>>, vector<16x32xf32>
      %c0_16 = arith.constant 0 : index
      %c0_17 = arith.constant 0 : index
      %24 = vector.load %arg5[%c0_16, %c0_17] : memref<16x32xf32, #tpu.memory_space<vmem>>, vector<16x32xf32>
      tpu.vector_store %arg5[%c0_16, %c0_17], %23 {strides = array<i32>} : memref<16x32xf32, #tpu.memory_space<vmem>>, vector<16x32xf32>,
    } else {
    }
    return
  }
  func.func @transform_0(%arg0: i32, %arg1: i32) -> (i32, i32) {
    %c0_i32 = arith.constant 0 : i32
    %c0_i32_0 = arith.constant 0 : i32
    return %arg0, %c0_i32 : i32, i32
  }
  func.func @transform_1(%arg0: i32, %arg1: i32) -> (i32, i32) {
    %c0_i32 = arith.constant 0 : i32
    %c0_i32_0 = arith.constant 0 : i32
    return %c0_i32, %arg1 : i32, i32
  }
  func.func @transform_2(%arg0: i32, %arg1: i32) -> (i32, i32) {
    %c0_i32 = arith.constant 0 : i32
    %c0_i32_0 = arith.constant 0 : i32
    return %arg1, %c0_i32 : i32, i32
  }
  func.func @transform_3(%arg0: i32, %arg1: i32) -> (i32, i32) {
    %c0_i32 = arith.constant 0 : i32
    %c0_i32_0 = arith.constant 0 : i32
    return %arg0, %c0_i32 : i32, i32
  }
}

</mosaic_0001>

<bundles_post_ra>
// kernel: tpu_custom_call.1
= control target key start
LH: loop header
LB: loop body
LE: loop exit
PB: predicated region body
PF: predicated region fallthrough
CT: control target
= control target key end

     0   :  { %s372_s0 = inlined_call_operand.vmem [shape: f32[16,32], index: 0, kind: input, shape index: {}]   ;;  %s373_s1 = inlined_call_operand.vmem [shape: f32[32,256], index: 1, kind: input, shape index: {}]   ;;  %s374_s2 = inlined_call_operand.vmem [shape: f32[128,32], index: 2, kind: input, shape index: {}]   ;;  %s375_s3 = inlined_call_operand.hbm [shape: f32[16,32], index: 3, kind: output, shape index: {}]  }
   0x1   :  { %v30_v0 = vld [vmem:[%s373_s1 + $0x30] sm:$0xff]  ;;  %v28_v1 = vld [vmem:[%s373_s1 + $0x20] sm:$0xff]  ;;  %v31_v3 = vld [vmem:[%s373_s1 + $0x38] sm:$0xff] }
   0x2   :  { %51 = vmatpush.msra.mxu0 %v30_v0  ;;  %v26_v2 = vld [vmem:[%s373_s1 + $0x10] sm:$0xff]  ;;  %v29_v4 = vld [vmem:[%s373_s1 + $0x28] sm:$0xff]  ;;  %74 = vmatpush.msra.mxu1 %v31_v3 }
   0x4   :  { %52 = vmatpush.msra.mxu0 %v28_v1 }
   0x5   :  { %8 = vsyncpa [#allocation4], 0  ;;  %v24_v5 = vld [vmem:[%s373_s1] sm:$0xff]  ;;  %v27_v6 = vld [vmem:[%s373_s1 + $0x18] sm:$0xff]  ;;  %vm19_vm0 = vcmask 261120   ;;  %75 = vmatpush.msra.mxu1 %v29_v4  ;;  %v257_v32 = vmov 0.0  }
   0x6   :  { %53 = vmatpush.msra.mxu0 %v26_v2  ;;  %v22_v7 = vld [vmem:[%s372_s0] sm:$0xff]  ;;  %v25_v8 = vld [vmem:[%s373_s1 + $0x8] sm:$0xff]  ;;  %v144_v10 = vld [vmem:[%s374_s2 + $0x78] sm:$0xff]  ;;  %20 = vst.msk [vmem:[#allocation2] sm:$0xff] %vm19_vm0, %v257_v32  ;;  %s259_s10 = smov 128   ;;  %s260_s11 = smov 8  }
   0x7   :  { %76 = vmatpush.msra.mxu1 %v27_v6  ;;  %v23_v9 = vld [vmem:[%s372_s0 + $0x8] sm:$0xff]  ;;  %145 = vmatpush.msra.mxu2 %v144_v10  ;;  %v143_v11 = vld [vmem:[%s374_s2 + $0x70] sm:$0xff]  ;;  %v141_v13 = vld [vmem:[%s374_s2 + $0x60] sm:$0xff]  ;;  %21 = vst.msk [vmem:[#allocation2 + $0x8] sm:$0xff] %vm19_vm0, %v257_v32  ;;  %s185_s0 = sshll.u32 %s375_s3, 4  ;;  %s186_s0 = int_to_ptr.hbm [resolvable:$true] %s185_s0 }
   0x8   :  { %54 = vmatpush.msra.mxu0 %v24_v5  ;;  %203 = vmatpush.msra.mxu3 %v144_v10  ;;  %v142_v12 = vld [vmem:[%s374_s2 + $0x68] sm:$0xff]  ;;  %v140_v14 = vld [vmem:[%s374_s2 + $0x58] sm:$0xff]  ;;  %v139_v15 = vld [vmem:[%s374_s2 + $0x50] sm:$0xff] }
   0x9   :  { %197 = vmatmul.msk.f32.vlgmr.msra.gmra.mxu0 %vm19_vm0, %v22_v7  ;;  %77 = vmatpush.msra.mxu1 %v25_v8  ;;  %v138_v16 = vld [vmem:[%s374_s2 + $0x48] sm:$0xff]  ;;  %v137_v17 = vld [vmem:[%s374_s2 + $0x40] sm:$0xff]  ;;  %v136_v18 = vld [vmem:[%s374_s2 + $0x38] sm:$0xff] }
   0xa   :  { %199 = vmatmul.msk.f32.vlgmr.msra.gmra.mxu1 %vm19_vm0, %v22_v7  ;;  %146 = vmatpush.msra.mxu2 %v143_v11  ;;  %v135_v19 = vld [vmem:[%s374_s2 + $0x30] sm:$0xff]  ;;  %v134_v20 = vld [vmem:[%s374_s2 + $0x28] sm:$0xff]  ;;  %v133_v21 = vld [vmem:[%s374_s2 + $0x20] sm:$0xff] }
   0xb   :  { %204 = vmatpush.msra.mxu3 %v143_v11  ;;  %v132_v22 = vld [vmem:[%s374_s2 + $0x18] sm:$0xff]  ;;  %v131_v23 = vld [vmem:[%s374_s2 + $0x10] sm:$0xff]  ;;  %v130_v24 = vld [vmem:[%s374_s2 + $0x8] sm:$0xff] }
   0xc   :  { %147 = vmatpush.msra.mxu2 %v142_v12  ;;  %v129_v25 = vld [vmem:[%s374_s2] sm:$0xff]  ;;  %s258_s2 = smov [#allocation3]  }
   0xd   :  { %205 = vmatpush.msra.mxu3 %v142_v12  ;;  %v127_v61 = vld [vmem:[#allocation2] sm:$0xff]  ;;  %s183_s7 = sshll.u32 %s258_s2, 4  ;;  %s184_s7 = int_to_ptr.vmem [resolvable:$true] %s183_s7 }
   0xe   :  { %148 = vmatpush.msra.mxu2 %v141_v13  ;;  %v128_v0 = vld [vmem:[#allocation2 + $0x8] sm:$0xff] }
   0xf   :  { %206 = vmatpush.msra.mxu3 %v141_v13 }
  0x10   :  { %149 = vmatpush.msra.mxu2 %v140_v14 }
  0x11   :  { %198 = vmatmul.msk.f32.gmra.mxu0 %vm19_vm0, %v23_v9  ;;  %207 = vmatpush.msra.mxu3 %v140_v14 }
  0x12   :  { %200 = vmatmul.msk.f32.gmra.mxu1 %vm19_vm0, %v23_v9  ;;  %150 = vmatpush.msra.mxu2 %v139_v15 }
  0x13   :  { %208 = vmatpush.msra.mxu3 %v139_v15 }
  0x14   :  { %151 = vmatpush.msra.mxu2 %v138_v16 }
  0x15   :  { %209 = vmatpush.msra.mxu3 %v138_v16 }
  0x16   :  { %152 = vmatpush.msra.mxu2 %v137_v17 }
  0x17   :  { %210 = vmatpush.msra.mxu3 %v137_v17 }
  0x18   :  { %153 = vmatpush.msra.mxu2 %v136_v18 }
  0x19   :  { %211 = vmatpush.msra.mxu3 %v136_v18 }
  0x1a   :  { %154 = vmatpush.msra.mxu2 %v135_v19 }
  0x1b   :  { %212 = vmatpush.msra.mxu3 %v135_v19 }
  0x1c   :  { %155 = vmatpush.msra.mxu2 %v134_v20 }
  0x1d   :  { %213 = vmatpush.msra.mxu3 %v134_v20 }
  0x1e   :  { %156 = vmatpush.msra.mxu2 %v133_v21 }
  0x1f   :  { %214 = vmatpush.msra.mxu3 %v133_v21 }
  0x20   :  { %157 = vmatpush.msra.mxu2 %v132_v22 }
  0x21   :  { %215 = vmatpush.msra.mxu3 %v132_v22 }
  0x22   :  { %158 = vmatpush.msra.mxu2 %v131_v23 }
  0x23   :  { %216 = vmatpush.msra.mxu3 %v131_v23 }
  0x24   :  { %159 = vmatpush.msra.mxu2 %v130_v24 }
  0x25   :  { %217 = vmatpush.msra.mxu3 %v130_v24 }
  0x26   :  { %160 = vmatpush.msra.mxu2 %v129_v25 }
  0x27   :  { %218 = vmatpush.msra.mxu3 %v129_v25 }
  0x86   :  { %v56_v26 = vpop.f32.mrf.mxu0 }
  0x87   :  { %v201_v27 = vmul.f32 -1.442695, %v56_v26  ;;  %v79_v44 = vpop.f32.mrf.mxu1 }
  0x89   :  { %223 = vpow2.f32 %v201_v27 }
  0x8e   :  { %v59_v28 = vpop.f32.mrf.mxu0 }
  0x8f   :  { %v224_v29 = vpop.eup %223  ;;  %v202_v30 = vmul.f32 -1.442695, %v59_v28  ;;  %v82_v58 = vpop.f32.mrf.mxu1 }
  0x90   :  { %v91_v31 = vadd.f32 1.0, %v224_v29 }
  0x91   :  { %225 = vpow2.f32 %v202_v30 }
  0x92   :  { %227 = vrcp.f32 %v91_v31  ;;  %v104_v38 = vand.u32 2147483648, %v91_v31  ;;  %v102_v40 = vand.u32 2147483647, %v91_v31  ;;  %vm98_vm2 = vweird.f32 %v91_v31 }
  0x94   :  { %v105_v43 = vor.u32 1.1754944e-38, %v104_v38  ;;  %vm103_vm4 = vcmp.eq.f32.partialorder %v102_v40, 8.507059e+37 }
  0x97   :  { %v226_v33 = vpop.eup %225 }
  0x98   :  { %v228_v34 = vpop.eup %227  ;;  %v92_v35 = vadd.f32 1.0, %v226_v33 }
  0x99   :  { %v94_v36 = vmul.f32 %v228_v34, %v91_v31  ;;  %vm99_vm1 = vweird.f32 %v228_v34 }
  0x9a   :  { %229 = vrcp.f32 %v92_v35  ;;  %vm100_vm3 = vmor %vm98_vm2, %vm99_vm1  ;;  %v119_v50 = vand.u32 2147483648, %v92_v35  ;;  %v117_v52 = vand.u32 2147483647, %v92_v35  ;;  %vm113_vm6 = vweird.f32 %v92_v35 }
  0x9b   :  { %v95_v37 = vsub.f32 1.0, %v94_v36 }
  0x9c   :  { %v120_v55 = vor.u32 1.1754944e-38, %v119_v50  ;;  %vm118_vm8 = vcmp.eq.f32.partialorder %v117_v52, 8.507059e+37 }
  0x9d   :  { %v96_v39 = vmul.f32 %v228_v34, %v95_v37 }
  0x9f   :  { %v97_v41 = vadd.f32 %v228_v34, %v96_v39 }
  0xa0   :  { %v230_v42 = vpop.eup %229 }
  0xa1   :  { %v101_v45 = vsel %vm100_vm3, %v228_v34, %v97_v41  ;;  %v109_v46 = vmul.f32 %v230_v42, %v92_v35  ;;  %vm114_vm5 = vweird.f32 %v230_v42 }
  0xa2   :  { %v106_v47 = vsel %vm103_vm4, %v105_v43, %v101_v45  ;;  %vm115_vm7 = vmor %vm113_vm6, %vm114_vm5 }
  0xa3   :  { %v123_v48 = vmul.f32 %v106_v47, %v56_v26  ;;  %v110_v49 = vsub.f32 1.0, %v109_v46 }
  0xa5   :  { %v111_v51 = vmul.f32 %v230_v42, %v110_v49  ;;  %v125_v53 = vmul.f32 %v123_v48, %v79_v44 }
  0xa7   :  { %v112_v54 = vadd.f32 %v230_v42, %v111_v51  ;;  %161 = vmatmul.f32.vlgmr.msra.gmra.mxu2 %v125_v53 }
  0xa9   :  { %v116_v56 = vsel %vm115_vm7, %v230_v42, %v112_v54 }
  0xaa   :  { %v121_v57 = vsel %vm118_vm8, %v120_v55, %v116_v56 }
  0xab   :  { %v124_v59 = vmul.f32 %v121_v57, %v59_v28 }
  0xad   :  { %v126_v60 = vmul.f32 %v124_v59, %v82_v58 }
  0xaf   :  { %164 = vmatmul.f32.vlgmr.msra.gmra.mxu3 %v126_v60 }
 0x12a   :  { %v162_v62 = vpop.f32.mrf.mxu2 }
 0x12b   :  { %v168_v63 = vadd.f32 %v162_v62, %v127_v61 }
 0x12d   :  { %170 = vst.msk [vmem:[#allocation2] sm:$0xff] %vm19_vm0, %v168_v63 }
 0x132   :  { %v165_v1 = vpop.f32.mrf.mxu3 }
 0x133   :  { %v169_v2 = vadd.f32 %v165_v1, %v128_v0 }
 0x134   :  { %v175_v3 = vld [vmem:[#allocation2] sm:$0xff] }
 0x135   :  { %171 = vst.msk [vmem:[#allocation2 + $0x8] sm:$0xff] %vm19_vm0, %v169_v2 }
 0x136   :  { %177 = vst.msk [vmem:[#allocation3] sm:$0xff] %vm19_vm0, %v175_v3 }
 0x13c   :  { %v176_v4 = vld [vmem:[#allocation2 + $0x8] sm:$0xff] }
 0x13d   :  { %178 = vst.msk [vmem:[#allocation3 + $0x8] sm:$0xff] %vm19_vm0, %v176_v4 }
 0x13e   :  { %191 = dma.vmem_to_hbm [thread:$0]  %s184_s7, 256, %s186_s0, [#allocation4], %s259_s10, %s259_s10, %s260_s11  }
 0x13f   :  { %255 = dma.done.wait [#allocation4], 256  }
 0x140   :  { %256 = vsyncadd [#allocation4], 4294967040 }
 0x141   :  { %196 = vsyncpa [#allocation4], 1 }

</bundles_post_ra>
